<compile_context>
chip_gen: v6e
topology: v6e:2x2x1
jax: 0.10.0
libtpu: 0.0.40
codegen_flags: <defaults>
</compile_context>

<pallas_src>
import numpy as np
import jax
import jax.numpy as jnp
from jax.experimental import pallas as pl
from jax.experimental.pallas import tpu as pltpu

_SQRT2_INV = 1.0 / np.sqrt(2.0)


def make_haar_filters(dtype=jnp.float32):
    """Filters matching DWT_2D.__init__ with wave='haar' (used by the reference).

    pywt 'haar': dec_lo = [1/sqrt2, 1/sqrt2], dec_hi = [-1/sqrt2, 1/sqrt2];
    the module reverses them before taking outer products.
    Returns stacked (4, 2, 2) filters in order [w_ll, w_lh, w_hl, w_hh].
    """
    dec_lo = jnp.asarray([_SQRT2_INV, _SQRT2_INV], dtype)[::-1]
    dec_hi = jnp.asarray([-_SQRT2_INV, _SQRT2_INV], dtype)[::-1]
    w_ll = jnp.outer(dec_lo, dec_lo)
    w_lh = jnp.outer(dec_hi, dec_lo)
    w_hl = jnp.outer(dec_lo, dec_hi)
    w_hh = jnp.outer(dec_hi, dec_hi)
    return jnp.stack([w_ll, w_lh, w_hl, w_hh], axis=0)


def _dwt_haar_kernel(x_ref, o_ref, xt_ref):
    # x_ref : (1, 1, TH2, 2W)   TH2 "super-rows", each = [image row 2i | row 2i+1]
    # o_ref : (1, 4, 1, TH2, W2) subbands LL, LH, HL, HH for the same rows
    # xt_ref: (2W, TH2) f32 VMEM scratch holding the transposed block
    two_w = x_ref.shape[3]
    w = two_w // 2
    w2 = w // 2

    # Single XLU transpose: image columns (and the even/odd-row halves) now live
    # on the sublane axis, where stride-2 slicing is a native strided load.
    xt_ref[...] = x_ref[0, 0].T

    a = xt_ref[pl.ds(0, w2, stride=2), :]        # x[2i,   2k  ]
    b = xt_ref[pl.ds(1, w2, stride=2), :]        # x[2i,   2k+1]
    c = xt_ref[pl.ds(w, w2, stride=2), :]        # x[2i+1, 2k  ]
    d = xt_ref[pl.ds(w + 1, w2, stride=2), :]    # x[2i+1, 2k+1]

    s_t = a + b          # pair-sum  of row 2i
    s_b = c + d          # pair-sum  of row 2i+1
    d_t = a - b          # pair-diff of row 2i
    d_b = c - d          # pair-diff of row 2i+1

    # Haar butterfly with constant +/-0.5 coefficients (VPU only, no MXU).
    o_ref[0, 0, 0] = (0.5 * (s_t + s_b)).T       # LL = 0.5*(a+b+c+d)
    o_ref[0, 1, 0] = (0.5 * (s_t - s_b)).T       # LH = 0.5*(a+b-c-d)
    o_ref[0, 2, 0] = (0.5 * (d_t + d_b)).T       # HL = 0.5*(a-b+c-d)
    o_ref[0, 3, 0] = (0.5 * (d_t - d_b)).T       # HH = 0.5*(a-b-c+d)


def _pick_row_block(h2, w):
    """Half-res rows per grid step: target ~1 MiB input blocks (TH2 * 2W * 4B),
    while keeping a legal Pallas block (TH2 == H2, or a multiple of 8 dividing H2)."""
    target = max(8, (1 << 20) // (8 * w))
    if h2 <= target:
        return h2
    best = h2
    th2 = 8
    while th2 <= target:
        if h2 % th2 == 0:
            best = th2
        th2 += 8
    return best


def dwt_2d_haar(x, *, row_block=None):
    """Forward Haar DWT matching DWT_Function.forward (stride-2 depthwise conv + cat)."""
    assert x.dtype == jnp.float32
    B, C, H, W = x.shape
    assert H % 2 == 0 and W % 2 == 0, "H and W must be even"
    H2, W2 = H // 2, W // 2

    th2 = _pick_row_block(H2, W) if row_block is None else row_block
    assert H2 % th2 == 0 and (th2 == H2 or th2 % 8 == 0)

    # Free (bitcast) reshape: each pair of image rows becomes one 2W-wide super-row.
    xr = x.reshape(B, C, H2, 2 * W)

    out = pl.pallas_call(
        _dwt_haar_kernel,
        out_shape=jax.ShapeDtypeStruct((B, 4, C, H2, W2), x.dtype),
        grid_spec=pltpu.PrefetchScalarGridSpec(
            num_scalar_prefetch=0,
            grid=(B, C, H2 // th2),
            in_specs=[
                pl.BlockSpec((1, 1, th2, 2 * W), lambda b, c, h: (b, c, h, 0)),
            ],
            out_specs=pl.BlockSpec(
                (1, 4, 1, th2, W2), lambda b, c, h: (b, 0, c, h, 0)),
            scratch_shapes=[pltpu.VMEM((2 * W, th2), jnp.float32)],
        ),
        compiler_params=pltpu.CompilerParams(
            dimension_semantics=("parallel", "parallel", "arbitrary")),
    )(xr)

    # Free reshape: (B, 4, C, H2, W2) -> (B, 4C, H2, W2); channel f*C + c is
    # subband f of input channel c, matching torch.cat([ll, lh, hl, hh], dim=1).
    return out.reshape(B, 4 * C, H2, W2)


def dwt_2d_ref(x, filters):
    """Pure-JAX reference: grouped (depthwise) stride-2 conv, NCHW, like PyTorch."""
    B, C, H, W = x.shape
    outs = []
    for f in range(4):
        w = jnp.broadcast_to(filters[f][None, None], (C, 1, 2, 2))
        y = jax.lax.conv_general_dilated(
            x, w, window_strides=(2, 2), padding="VALID",
            dimension_numbers=("NCHW", "OIHW", "NCHW"),
            feature_group_count=C)
        outs.append(y)
    return jnp.concatenate(outs, axis=1)


if __name__ == "__main__":
    key = jax.random.PRNGKey(0)
    B, C, H, W = 2, 4, 16, 16
    x = jax.random.normal(key, (B, C, H, W), dtype=jnp.float32)

    filters = make_haar_filters(jnp.float32)

    out = jax.block_until_ready(dwt_2d_haar(x))
    assert out.shape == (B, 4 * C, H // 2, W // 2), out.shape
    ref = dwt_2d_ref(x, filters)
    np.testing.assert_allclose(np.asarray(out), np.asarray(ref), atol=1e-5, rtol=1e-5)

    # Also exercise the row-tiled (multi-block grid) path.
    x2 = jax.random.normal(jax.random.PRNGKey(1), (1, 2, 64, 128), dtype=jnp.float32)
    out2 = jax.block_until_ready(dwt_2d_haar(x2, row_block=8))
    ref2 = dwt_2d_ref(x2, filters)
    np.testing.assert_allclose(np.asarray(out2), np.asarray(ref2), atol=1e-5, rtol=1e-5)

    print("KERNEL_OK")
</pallas_src>

<mosaic_0001>
module attributes {stable_mosaic.version = 11 : i64} {
  func.func @_dwt_haar_kernel(%arg0: i32, %arg1: i32, %arg2: i32, %arg3: memref<1x1x8x32xf32, #tpu.memory_space<vmem>>, %arg4: memref<1x4x1x8x8xf32, #tpu.memory_space<vmem>>, %arg5: memref<32x8xf32, #tpu.memory_space<vmem>>) attributes {dimension_semantics = [#tpu.dimension_semantics<parallel>, #tpu.dimension_semantics<parallel>, #tpu.dimension_semantics<arbitrary>], iteration_bounds = array<i64: 2, 4, 1>, scalar_prefetch = 0 : i64, scratch_operands = 1 : i64, tpu.core_type = #tpu.core_type<tc>, window_params = [{transform_indices = @transform_0, window_bounds = array<i64: 1, 1, 8, 32>}, {transform_indices = @transform_1, window_bounds = array<i64: 1, 4, 1, 8, 8>}]} {
    %c0 = arith.constant 0 : index
    %c0_0 = arith.constant 0 : index
    %c0_1 = arith.constant 0 : index
    %c0_2 = arith.constant 0 : index
    %0 = vector.load %arg3[%c0, %c0_0, %c0_1, %c0_2] : memref<1x1x8x32xf32, #tpu.memory_space<vmem>>, vector<1x1x8x32xf32>
    %1 = vector.shape_cast %0 : vector<1x1x8x32xf32> to vector<8x32xf32>
    %2 = tpu.transpose %1, [1, 0] : vector<8x32xf32> -> vector<32x8xf32>
    %c0_3 = arith.constant 0 : index
    %c0_4 = arith.constant 0 : index
    %3 = vector.load %arg5[%c0_3, %c0_4] : memref<32x8xf32, #tpu.memory_space<vmem>>, vector<32x8xf32>
    tpu.vector_store %arg5[%c0_3, %c0_4], %2 {strides = array<i32>} : memref<32x8xf32, #tpu.memory_space<vmem>>, vector<32x8xf32>,
    %c0_5 = arith.constant 0 : index
    %c0_6 = arith.constant 0 : index
    %4 = tpu.strided_load %arg5[%c0_5, %c0_6] {strides = array<i32: 2, 1>} : memref<32x8xf32, #tpu.memory_space<vmem>>, vector<8x8xf32>
    %c1 = arith.constant 1 : index
    %c0_7 = arith.constant 0 : index
    %5 = tpu.strided_load %arg5[%c1, %c0_7] {strides = array<i32: 2, 1>} : memref<32x8xf32, #tpu.memory_space<vmem>>, vector<8x8xf32>
    %c16 = arith.constant 16 : index
    %c0_8 = arith.constant 0 : index
    %6 = tpu.strided_load %arg5[%c16, %c0_8] {strides = array<i32: 2, 1>} : memref<32x8xf32, #tpu.memory_space<vmem>>, vector<8x8xf32>
    %c17 = arith.constant 17 : index
    %c0_9 = arith.constant 0 : index
    %7 = tpu.strided_load %arg5[%c17, %c0_9] {strides = array<i32: 2, 1>} : memref<32x8xf32, #tpu.memory_space<vmem>>, vector<8x8xf32>
    %8 = arith.addf %4, %5 : vector<8x8xf32>
    %9 = arith.addf %6, %7 : vector<8x8xf32>
    %10 = arith.subf %4, %5 : vector<8x8xf32>
    %11 = arith.subf %6, %7 : vector<8x8xf32>
    %12 = arith.addf %8, %9 : vector<8x8xf32>
    %cst = arith.constant 5.000000e-01 : f32
    %13 = vector.broadcast %cst : f32 to vector<8x8xf32>
    %14 = arith.mulf %13, %12 : vector<8x8xf32>
    %15 = tpu.transpose %14, [1, 0] : vector<8x8xf32> -> vector<8x8xf32>
    %c0_10 = arith.constant 0 : index
    %c0_11 = arith.constant 0 : index
    %c0_12 = arith.constant 0 : index
    %c0_13 = arith.constant 0 : index
    %c0_14 = arith.constant 0 : index
    %16 = vector.load %arg4[%c0_10, %c0_11, %c0_12, %c0_13, %c0_14] : memref<1x4x1x8x8xf32, #tpu.memory_space<vmem>>, vector<1x1x1x8x8xf32>
    %17 = vector.shape_cast %16 : vector<1x1x1x8x8xf32> to vector<8x8xf32>
    %18 = vector.shape_cast %15 : vector<8x8xf32> to vector<1x1x1x8x8xf32>
    tpu.vector_store %arg4[%c0_10, %c0_11, %c0_12, %c0_13, %c0_14], %18 {strides = array<i32>} : memref<1x4x1x8x8xf32, #tpu.memory_space<vmem>>, vector<1x1x1x8x8xf32>,
    %19 = arith.subf %8, %9 : vector<8x8xf32>
    %cst_15 = arith.constant 5.000000e-01 : f32
    %20 = vector.broadcast %cst_15 : f32 to vector<8x8xf32>
    %21 = arith.mulf %20, %19 : vector<8x8xf32>
    %22 = tpu.transpose %21, [1, 0] : vector<8x8xf32> -> vector<8x8xf32>
    %c0_16 = arith.constant 0 : index
    %c1_17 = arith.constant 1 : index
    %c0_18 = arith.constant 0 : index
    %c0_19 = arith.constant 0 : index
    %c0_20 = arith.constant 0 : index
    %23 = vector.load %arg4[%c0_16, %c1_17, %c0_18, %c0_19, %c0_20] : memref<1x4x1x8x8xf32, #tpu.memory_space<vmem>>, vector<1x1x1x8x8xf32>
    %24 = vector.shape_cast %23 : vector<1x1x1x8x8xf32> to vector<8x8xf32>
    %25 = vector.shape_cast %22 : vector<8x8xf32> to vector<1x1x1x8x8xf32>
    tpu.vector_store %arg4[%c0_16, %c1_17, %c0_18, %c0_19, %c0_20], %25 {strides = array<i32>} : memref<1x4x1x8x8xf32, #tpu.memory_space<vmem>>, vector<1x1x1x8x8xf32>,
    %26 = arith.addf %10, %11 : vector<8x8xf32>
    %cst_21 = arith.constant 5.000000e-01 : f32
    %27 = vector.broadcast %cst_21 : f32 to vector<8x8xf32>
    %28 = arith.mulf %27, %26 : vector<8x8xf32>
    %29 = tpu.transpose %28, [1, 0] : vector<8x8xf32> -> vector<8x8xf32>
    %c0_22 = arith.constant 0 : index
    %c2 = arith.constant 2 : index
    %c0_23 = arith.constant 0 : index
    %c0_24 = arith.constant 0 : index
    %c0_25 = arith.constant 0 : index
    %30 = vector.load %arg4[%c0_22, %c2, %c0_23, %c0_24, %c0_25] : memref<1x4x1x8x8xf32, #tpu.memory_space<vmem>>, vector<1x1x1x8x8xf32>
    %31 = vector.shape_cast %30 : vector<1x1x1x8x8xf32> to vector<8x8xf32>
    %32 = vector.shape_cast %29 : vector<8x8xf32> to vector<1x1x1x8x8xf32>
    tpu.vector_store %arg4[%c0_22, %c2, %c0_23, %c0_24, %c0_25], %32 {strides = array<i32>} : memref<1x4x1x8x8xf32, #tpu.memory_space<vmem>>, vector<1x1x1x8x8xf32>,
    %33 = arith.subf %10, %11 : vector<8x8xf32>
    %cst_26 = arith.constant 5.000000e-01 : f32
    %34 = vector.broadcast %cst_26 : f32 to vector<8x8xf32>
    %35 = arith.mulf %34, %33 : vector<8x8xf32>
    %36 = tpu.transpose %35, [1, 0] : vector<8x8xf32> -> vector<8x8xf32>
    %c0_27 = arith.constant 0 : index
    %c3 = arith.constant 3 : index
    %c0_28 = arith.constant 0 : index
    %c0_29 = arith.constant 0 : index
    %c0_30 = arith.constant 0 : index
    %37 = vector.load %arg4[%c0_27, %c3, %c0_28, %c0_29, %c0_30] : memref<1x4x1x8x8xf32, #tpu.memory_space<vmem>>, vector<1x1x1x8x8xf32>
    %38 = vector.shape_cast %37 : vector<1x1x1x8x8xf32> to vector<8x8xf32>
    %39 = vector.shape_cast %36 : vector<8x8xf32> to vector<1x1x1x8x8xf32>
    tpu.vector_store %arg4[%c0_27, %c3, %c0_28, %c0_29, %c0_30], %39 {strides = array<i32>} : memref<1x4x1x8x8xf32, #tpu.memory_space<vmem>>, vector<1x1x1x8x8xf32>,
    return
  }
  func.func @transform_0(%arg0: i32, %arg1: i32, %arg2: i32) -> (i32, i32, i32, i32) {
    %c0_i32 = arith.constant 0 : i32
    %c0_i32_0 = arith.constant 0 : i32
    return %arg0, %arg1, %arg2, %c0_i32 : i32, i32, i32, i32
  }
  func.func @transform_1(%arg0: i32, %arg1: i32, %arg2: i32) -> (i32, i32, i32, i32, i32) {
    %c0_i32 = arith.constant 0 : i32
    %c0_i32_0 = arith.constant 0 : i32
    %c0_i32_1 = arith.constant 0 : i32
    return %arg0, %c0_i32, %arg1, %arg2, %c0_i32_0 : i32, i32, i32, i32, i32
  }
}

</mosaic_0001>

<bundles_post_ra>
// kernel: tpu_custom_call.1
= control target key start
LH: loop header
LB: loop body
LE: loop exit
PB: predicated region body
PF: predicated region fallthrough
CT: control target
= control target key end

     0   :  { %6 = vsyncpa [#allocation4], 0  ;;  %s883_s0 = inlined_call_operand.hbm [shape: f32[2,4,8,32], index: 0, kind: input, shape index: {}]   ;;  %s884_s1 = inlined_call_operand.hbm [shape: f32[2,4,4,8,8], index: 1, kind: output, shape index: {}]  }
   0x1   :  { %8 = vsyncpa [#allocation4 + $0x1], 0 }
   0x2   :  { %9 = vsyncpa [#allocation5], 0 }
   0x3   :  { %11 = vsyncpa [#allocation5 + $0x1], 0  ;;  %s704_s6 = smov 0   ;;  %s706_s7 = smov 0  }
   0x4   :  { %s708_s8 = smov 0   ;;  %s710_s9 = smov 0  }
   0x5   :  { %s712_s10 = smov 0   ;;  %s714_s11 = smov 0  }
   0x6   :  { %s716_s12 = smov 0   ;;  %s718_s13 = smov 0  }
   0x7 LB: > { %s463_s14 = sadd.s32 4294967295, %s687_s13   ;;  %s464_s15 = sadd.s32 4294967294, %s687_s13   ;;  %s687_s13 = sphi %s718_s13, %s17_s13   ;;  %s683_s12 = sphi %s716_s12, %s897_s12   ;;  %s679_s11 = sphi %s714_s11, %s896_s11   ;;  %s675_s10 = sphi %s712_s10, %s895_s10   ;;  %s671_s9 = sphi %s710_s9, %s894_s9   ;;  %s667_s8 = sphi %s708_s8, %s893_s8   ;;  %s663_s7 = sphi %s706_s7, %s892_s7   ;;  %s659_s6 = sphi %s704_s6, %s891_s6  }
   0x8   : > { %s32_s16 = sadd.s32 1, %s679_s11  ;;  %s36_s17 = sadd.s32 1, %s683_s12 }
   0x9   : > { %p34_p0 = scmp.ge.s32.totalorder %s32_s16, 4  ;;  %s47_s18 = sadd.s32 1, %s667_s8 }
   0xa   : > { %p54_p1 = scmp.ne.s32.totalorder %s667_s8, %s663_s7  ;;  %p55_p2 = scmp.eq.s32.totalorder %s687_s13, 0 }
   0xb   : > { %s899_s16 = smov (%p34_p0, %s32_s16), 0  ;;  %s901_s17 = smov (!%p34_p0, %s36_s17), %s683_s12 }
   0xc   : > { %s41_s19 = ssub.s32 %s679_s11, %s899_s16  ;;  %p757_p3 = por %p55_p2, %p54_p1 }
   0xd   : > { %p38_p4 = scmp.ge.s32.totalorder %s901_s17, 2  ;;  %p60_p5 = scmp.ne.s32.totalorder %s663_s7, %s659_s6 }
   0xe   : > { %p61_p6 = scmp.eq.s32.totalorder %s463_s14, 0  ;;  %p88_p7 = scmp.eq.s32.totalorder %s463_s14, 7 }
   0xf   : > { %s903_s17 = smov (%p38_p4, %s901_s17), 0  ;;  %p94_p10 = scmp.eq.s32.totalorder %s464_s15, 7 }
  0x10   : > { %p765_p8 = por %p61_p6, %p60_p5  ;;  %p769_p9 = por %p88_p7, %p54_p1 }
  0x11   : > { %s40_s23 = ssub.s32 %s683_s12, %s903_s17  ;;  %p775_p12 = por %p94_p10, %p60_p5 }
  0x12   : > { %s42_s24 = sor.u32 %s41_s19, %s40_s23  ;;  %p493_p13 = scmp.lt.s32.totalorder %s687_s13, 8 }
  0x13   : > { %p45_p11 = scmp.eq.s32.totalorder %s42_s24, 0  ;;  %s114_s26 = sand.u32 1, %s667_s8  }
  0x14   : > { %s888_s25 = scalar_select %p775_p12, 1, 0 }
  0x15   : > { %s782_s27 = scalar_select %p45_p11, %s667_s8, %s47_s18  }
  0x16   : > { %s467_s28 = sshll.u32 %s114_s26, 3  ;;  %s468_s29 = sshll.u32 %s683_s12, 2 }
  0x17   : > { %s124_s30 = sadd.s32 %s679_s11, %s468_s29  ;;  %s118_s2 = scalar_lea.vmem [#allocation3], %s467_s28 }
  0x18   : > { %s128_s3 = sshll.u32 %s118_s2, 4  ;;  %s469_s4 = sshll.u32 %s124_s30, 7  ;;  %s129_s3 = int_to_ptr.vmem [resolvable:$true] %s128_s3 }
  0x19   : > { %s126_s15 = scalar_lea.hbm %s883_s0, %s469_s4  ;;  %p791_p0 = pnand %p493_p13, %p757_p3 }
  0x1a   : > { %p470_p1 = scmp.ge.s32.totalorder %s687_s13, 1  ;;  %p133_p2 = scmp.lt.s32.totalorder %s687_s13, 9 }
  0x1b   : > { %s115_s18 = scalar_lea.sflag [#allocation4], %s114_s26  ;;  %p565_p4 = pneg %p791_p0 }
  0x1c   : > { %s576_s23 = scalar_lea.vmem %s129_s3, 128  ;;  %s689_s24 = smov [#allocation3]  }
  0x1d   : > { %p577_p5 = scmp.ne.s32.totalorder %s129_s3, %s576_s23  ;;  %s581_s28 = sshll.u32 %s689_s24, 4  ;;  %s582_s28 = int_to_ptr.vmem [resolvable:$false] %s581_s28 }
  0x1e   : > { %s583_s29 = scalar_lea.vmem %s582_s28, 256  ;;  %p584_p10 = scmp.lt.s32.totalorder %s129_s3, %s582_s28 }
  0x1f   : > { %p579_p6 = pnand %p577_p5, %p565_p4  ;;  %p585_p11 = scmp.lt.s32.totalorder %s583_s29, %s576_s23 }
  0x21   : > { %p580_p7 = pneg %p579_p6  ;;  %p586_p3 = por %p585_p11, %p584_p10 }
  0x23   : > { %p587_p13 = pnand %p586_p3, %p580_p7 }
  0x25   : > { %590 = shalt.err (!%p587_p13)
}
  0x26   : > { %488 = dma.hbm_to_vmem [thread:$0]  (!%p791_p0), %s126_s15, 128, %s129_s3, %s115_s18  }
  0x27   : > { %p134_p12 = pnand %p470_p1, %p133_p2 }
  0x28   : > { %s806_s20 = sand.u32 (!%p134_p12), 1, %s663_s7  }
  0x29   : > { %137 = sbr.rel (%p134_p12) target bundleno = 347 (0x15b), region = 24  ;;  %s471_s26 = sshll.u32 (!%p134_p12), %s806_s20, 3 }
  0x2a   : > { %s140_s30 = scalar_lea.sflag (!%p134_p12), [#allocation4], %s806_s20  ;;  %s143_s2 = scalar_lea.vmem (!%p134_p12), [#allocation3], %s471_s26 }
  0x2e   : > { %650 = dma.done.wait (%p765_p8), %s140_s30, 128  }
  0x2f   : > { %652 = vsyncadd (%p765_p8), %s140_s30, 4294967168  ;;  %v162_v0 = vld [vmem:[%s143_s2] sm:$0xff]  ;;  %vm195_vm0 = vcmask 64512   ;;  %s472_s21 = sshll.u32 %s806_s20, 5  ;;  %s477_s3 = sshll.u32 %s675_s10, 4 }
  0x30   : > { %163 = vxpose.xlu0.b32.start.end [1/1] (short) (narrow) %v162_v0, 32  ;;  %s367_s4 = sadd.s32 %s671_s9, %s477_s3  ;;  %s161_s5 = scalar_lea.vmem [#allocation6], %s472_s21 }
  0x31   : > { %s370_s14 = sshll.u32 %s161_s5, 4  ;;  %s478_s15 = sshll.u32 %s367_s4, 7  ;;  %s823_s14 = int_to_ptr.vmem [resolvable:$true] %s370_s14 }
  0x32   : > { %s829_s18 = scalar_lea.hbm %s884_s1, %s478_s15  ;;  %s355_s9 = scalar_lea.sflag [#allocation5], %s806_s20 }
  0x33   : > { %s591_s23 = scalar_lea.vmem %s823_s14, 512  ;;  %s690_s24 = smov [#allocation6]  }
  0x34   : > { %p592_p8 = scmp.ne.s32.totalorder %s823_s14, %s591_s23  ;;  %s595_s28 = sshll.u32 %s690_s24, 4  ;;  %s596_s28 = int_to_ptr.vmem [resolvable:$false] %s595_s28 }
  0x35   : > { %s597_s29 = scalar_lea.vmem %s596_s28, 1024  ;;  %p598_p1 = scmp.lt.s32.totalorder %s823_s14, %s596_s28 }
  0x36   : > { %p593_p12 = pnand %p592_p8, %p769_p9  ;;  %p599_p2 = scmp.lt.s32.totalorder %s597_s29, %s591_s23 }
  0x38   : > { %p594_p0 = pneg %p593_p12  ;;  %p600_p4 = por %p599_p2, %p598_p1 }
  0x3a   : > { %p601_p5 = pnand %p600_p4, %p594_p0 }
  0xac   : > { %v179_v1 = vpop.trf.xlu0 }
  0xad   : > { %196 = vst.msk [vmem:[#allocation2] sm:$0xff] %vm195_vm0, %v179_v1 }
  0xb0   : > { %v180_v2 = vpop.trf.xlu0 }
  0xb1   : > { %197 = vst.msk [vmem:[#allocation2 + $0x8] sm:$0xff] %vm195_vm0, %v180_v2 }
  0xb4   : > { %v181_v3 = vpop.trf.xlu0 }
  0xb5   : > { %198 = vst.msk [vmem:[#allocation2 + $0x10] sm:$0xff] %vm195_vm0, %v181_v3 }
  0xb8   : > { %v182_v4 = vpop.trf.xlu0  ;;  %v200_v5 = vld [vmem:[#allocation2] ss:$2 sm:$0xff]  ;;  %v202_v6 = vld [vmem:[#allocation2 + $0x1] ss:$2 sm:$0xff] }
  0xb9   : > { %199 = vst.msk [vmem:[#allocation2 + $0x18] sm:$0xff] %vm195_vm0, %v182_v4  ;;  %v207_v9 = vadd.f32 %v202_v6, %v200_v5  ;;  %v209_v14 = vsub.f32 %v200_v5, %v202_v6 }
  0xc0   : > { %v204_v7 = vld [vmem:[#allocation2 + $0x10] ss:$2 sm:$0xff]  ;;  %v206_v8 = vld [vmem:[#allocation2 + $0x11] ss:$2 sm:$0xff] }
  0xc1   : > { %v208_v10 = vadd.f32 %v206_v8, %v204_v7  ;;  %v210_v11 = vsub.f32 %v204_v7, %v206_v8 }
  0xc3   : > { %v246_v12 = vsub.f32 %v207_v9, %v208_v10  ;;  %v211_v13 = vadd.f32 %v208_v10, %v207_v9  ;;  %v282_v17 = vadd.f32 %v210_v11, %v209_v14  ;;  %v318_v19 = vsub.f32 %v209_v14, %v210_v11 }
  0xc5   : > { %v247_v15 = vmul.f32 0.5, %v246_v12  ;;  %v212_v16 = vmul.f32 0.5, %v211_v13  ;;  %v283_v18 = vmul.f32 0.5, %v282_v17  ;;  %v319_v20 = vmul.f32 0.5, %v318_v19 }
  0xc7   : > { %248 = vxpose.xlu1.b32.start.end [1/1] (short) (narrow) %v247_v15, 8  ;;  %213 = vxpose.xlu0.b32.start.end [1/1] (short) (narrow) %v212_v16, 8 }
  0xcb   : > { %284 = vxpose.xlu1.b32.start.end [1/1] (short) (narrow) %v283_v18, 8 }
  0xcf   : > { %320 = vxpose.xlu1.b32.start.end [1/1] (short) (narrow) %v319_v20, 8 }
 0x143   : > { %v264_v21 = vpop.trf.xlu1  ;;  %v229_v22 = vpop.trf.xlu0 }
 0x144   : > { %473 = vst.msk [vmem:[%s161_s5 + $0x8] sm:$0xff] %vm195_vm0, %v264_v21  ;;  %245 = vst.msk [vmem:[%s161_s5] sm:$0xff] %vm195_vm0, %v229_v22 }
 0x147   : > { %v300_v23 = vpop.trf.xlu1 }
 0x148   : > { %474 = vst.msk [vmem:[%s161_s5 + $0x10] sm:$0xff] %vm195_vm0, %v300_v23 }
 0x14b   : > { %v336_v24 = vpop.trf.xlu1 }
 0x14c   : > { %475 = vst.msk [vmem:[%s161_s5 + $0x18] sm:$0xff] %vm195_vm0, %v336_v24 }
 0x14d   : > { %604 = shalt.err (!%p601_p5)
}
 0x14e   : > { %s605_s26 = scalar_lea.hbm %s829_s18, 512  ;;  %s609_s21 = scalar_lea.hbm %s884_s1, 4096 }
 0x14f   : > { %p606_p6 = scmp.ne.s32.totalorder %s829_s18, %s605_s26  ;;  %p610_p11 = scmp.lt.s32.totalorder %s829_s18, %s884_s1 }
 0x150   : > { %p611_p3 = scmp.lt.s32.totalorder %s609_s21, %s605_s26 }
 0x151   : > { %p607_p7 = pnand %p606_p6, %p769_p9 }
 0x152   : > { %p612_p13 = por %p611_p3, %p610_p11 }
 0x153   : > { %p608_p10 = pneg %p607_p7 }
 0x155   : > { %p613_p8 = pnand %p612_p13, %p608_p10 }
 0x157   : > { %616 = shalt.err (!%p613_p8)
}
 0x158   : > { %s691_s5 = smov 128   ;;  %s692_s15 = smov 512  }
 0x159   : > { %s693_s10 = smov 8  }
 0x15a   : > { %483 = dma.vmem_to_hbm [thread:$0]  (%p769_p9), %s823_s14, 512, %s829_s18, %s355_s9, %s691_s5, %s692_s15, %s693_s10  }
 0x15b PF: > { %p494_p12 = scmp.ge.s32.totalorder %s687_s13, 2  ;;  %s385_s19 = sand.u32 1, %s659_s6  }
 0x15c   : > { %p890_p0 = scmp.ne.s32.totalorder %s888_s25, 0  ;;  %s386_s23 = scalar_lea.sflag [#allocation5], %s385_s19 }
 0x15e   : > { %p490_p1 = pnand %p494_p12, %p890_p0 }
 0x160   : > { %p491_p2 = pneg %p490_p1 }
 0x162   : > { %654 = dma.done.wait (%p491_p2), %s386_s23, 512  }
 0x163   : > { %656 = vsyncadd (%p491_p2), %s386_s23, 4294966784  ;;  %s17_s13 = sadd.s32 1, %s687_s13   ;;  %s891_s6 = smov %s663_s7 }
 0x164   : > { %p14_p4 = scmp.ge.s32.totalorder %s17_s13, 10   ;;  %s892_s7 = smov %s667_s8 }
 0x165   : > { %s893_s8 = smov %s782_s27  ;;  %s894_s9 = smov %s679_s11 }
 0x166   : > { %s895_s10 = smov %s683_s12  ;;  %s896_s11 = smov %s899_s16 }
 0x167   : > { %s897_s12 = smov %s903_s17  ;;  %16 = sbr.rel (!%p14_p4) target bundleno = 7 (0x7), region = 75 }
 0x16c   :  { %391 = vsyncpa [#allocation4], 1 }
 0x16d   :  { %393 = vsyncpa [#allocation4 + $0x1], 1 }
 0x16e   :  { %394 = vsyncpa [#allocation5], 1 }
 0x16f   :  { %396 = vsyncpa [#allocation5 + $0x1], 1 }

</bundles_post_ra>
